<compile_context>
chip_gen: v7x
topology: tpu7x:2x2x1
jax: 0.10.0
libtpu: 0.0.40
codegen_flags: <defaults>
</compile_context>

<pallas_src>
import functools
import math

import jax
import jax.numpy as jnp
from jax.experimental import pallas as pl
from jax.experimental.pallas import tpu as pltpu


def _round_up(x: int, m: int) -> int:
    return ((x + m - 1) // m) * m


# ----------------------------- Pallas kernel --------------------------------
def _fused_mlp_kernel(*refs, n_layers: int, compute_dtype):
    """Fused Linear(+ReLU) stack for one batch tile.

    refs = (x_ref, w0_ref, b0_ref, ..., w{L-1}_ref, b{L-1}_ref, o_ref)
      x_ref : (tm, D_0)        f32 batch tile
      w_l   : (D_l, D_{l+1})   compute_dtype, already (in, out) layout
      b_l   : (1, D_{l+1})     f32
      o_ref : (tm, D_L)        f32
    Intermediate activations live in vregs/VMEM only; they never touch HBM.
    """
    x_ref = refs[0]
    o_ref = refs[-1]
    wb_refs = refs[1:-1]

    h = x_ref[...]
    for layer in range(n_layers):
        w = wb_refs[2 * layer][...]
        b = wb_refs[2 * layer + 1][...]
        acc = jnp.dot(h.astype(compute_dtype), w,
                      preferred_element_type=jnp.float32)   # MXU, f32 accumulate
        acc = acc + b                                        # f32 VPU epilogue
        if layer < n_layers - 1:                             # hidden layers only
            acc = jnp.maximum(acc, 0.0)
        h = acc
    o_ref[...] = h.astype(o_ref.dtype)


# ------------------------------- Wrapper -------------------------------------
def init_torch_style_params(key, input_dim, net_arch, features_dim):
    """PyTorch-style init: weight stored as (out, in), like nn.Linear."""
    dims = [input_dim] + list(net_arch) + [features_dim]
    params = []
    for d_in, d_out in zip(dims[:-1], dims[1:]):
        key, kw, kb = jax.random.split(key, 3)
        bound = 1.0 / math.sqrt(d_in)
        w = jax.random.uniform(kw, (d_out, d_in), jnp.float32, -bound, bound)
        b = jax.random.uniform(kb, (d_out,), jnp.float32, -bound, bound)
        params.append((w, b))
    return params


def prepare_params(torch_style_params, compute_dtype=jnp.float32):
    """ONE-TIME conversion (outside the forward path): (out,in) -> (in,out),
    optional bf16 cast for the matmul operands, bias reshaped to (1, d_out)."""
    prepared = []
    for w, b in torch_style_params:
        prepared.append((jnp.asarray(w.T, dtype=compute_dtype),
                         jnp.asarray(b, dtype=jnp.float32).reshape(1, -1)))
    return prepared


def mlp_feature_extractor_forward(prepared_params, observations, *,
                                  block_m: int = 128,
                                  vmem_cap_bytes: int = 48 * 1024 * 1024):
    """Mirrors MLPfeature_extractor.forward: hidden Linear+ReLU layers (if any),
    then a final Linear with no activation — all inside one pallas_call."""
    assert observations.ndim == 2, "observations must be (batch, obs_dim)"
    B, d_in = observations.shape
    n_layers = len(prepared_params)
    assert n_layers >= 1
    compute_dtype = prepared_params[0][0].dtype

    dims = [d_in] + [w.shape[1] for w, _ in prepared_params]
    d_out = dims[-1]

    # Tile / pad the batch axis (sublane multiple of 8; tm capped at 128).
    tm = min(block_m, _round_up(B, 8))
    b_pad = _round_up(B, tm)
    x = observations
    if b_pad != B:
        x = jnp.pad(x, ((0, b_pad - B), (0, 0)))
    grid = (b_pad // tm,)

    in_specs = [pl.BlockSpec((tm, d_in), lambda i: (i, 0))]
    flat_args = [x]
    for w, b in prepared_params:
        # Constant index_map -> weights/biases DMA'd once, VMEM-resident.
        in_specs.append(pl.BlockSpec(w.shape, lambda i: (0, 0)))
        in_specs.append(pl.BlockSpec(b.shape, lambda i: (0, 0)))
        flat_args.append(w)
        flat_args.append(b)

    out_specs = pl.BlockSpec((tm, d_out), lambda i: (i, 0))
    out_shape = jax.ShapeDtypeStruct((b_pad, d_out), observations.dtype)

    # Cost estimate (helps XLA schedule surrounding RL-loop work).
    flops = sum(2 * b_pad * dims[l] * dims[l + 1] for l in range(n_layers))
    wb_bytes = sum(int(w.size) * w.dtype.itemsize + int(b.size) * b.dtype.itemsize
                   for w, b in prepared_params)
    io_bytes = int(x.size) * x.dtype.itemsize + b_pad * d_out * 4
    cost = pl.CostEstimate(flops=flops, transcendentals=0,
                           bytes_accessed=wb_bytes + io_bytes)

    # VMEM budget: resident weights + double-buffered x/out tiles + activations.
    act_bytes = 4 * tm * max(dims)
    vmem_est = wb_bytes + 2 * (4 * tm * d_in) + 2 * (4 * tm * d_out) + 2 * act_bytes
    vmem_limit = int(min(max(2 * vmem_est, 32 * 1024 * 1024), vmem_cap_bytes))

    kernel = functools.partial(_fused_mlp_kernel, n_layers=n_layers,
                               compute_dtype=compute_dtype)
    out = pl.pallas_call(
        kernel,
        out_shape=out_shape,
        grid_spec=pltpu.PrefetchScalarGridSpec(
            num_scalar_prefetch=0,
            grid=grid,
            in_specs=in_specs,
            out_specs=out_specs,
        ),
        compiler_params=pltpu.CompilerParams(
            dimension_semantics=("parallel",),   # megacore-shard batch tiles
            vmem_limit_bytes=vmem_limit,
        ),
        cost_estimate=cost,
    )(*flat_args)
    return out[:B]


# ------------------------------ Reference -------------------------------------
def reference_forward(torch_style_params, observations, net_arch):
    """Pure-JAX reference with PyTorch (out, in) weights and f32 math."""
    x = observations
    n_hidden = len(net_arch)
    for i, (w, b) in enumerate(torch_style_params):
        x = jnp.dot(x, w.T, precision=jax.lax.Precision.HIGHEST) + b
        if i < n_hidden:
            x = jnp.maximum(x, 0.0)
    return x


# --------------------------------- Main ---------------------------------------
if __name__ == "__main__":
    key = jax.random.PRNGKey(0)
    input_dim = 16
    features_dim = 256

    # (name, net_arch, batch, compute_dtype, tolerance)
    cases = [
        ("default net_arch=[], B=4, f32", [], 4, jnp.float32, 1e-4),
        ("fused net_arch=[64,64], B=4, f32", [64, 64], 4, jnp.float32, 1e-4),
        ("fused net_arch=[64,64], B=300, f32 (padded, multi-tile grid)",
         [64, 64], 300, jnp.float32, 1e-4),
        ("default net_arch=[], B=4, bf16 operands", [], 4, jnp.bfloat16, 5e-2),
    ]

    for idx, (name, net_arch, batch, compute_dtype, tol) in enumerate(cases):
        k_case = jax.random.fold_in(key, idx)
        k_obs, k_par = jax.random.split(k_case)

        observations = jax.random.normal(k_obs, (batch, input_dim), jnp.float32)
        torch_params = init_torch_style_params(k_par, input_dim, net_arch,
                                               features_dim)
        params = prepare_params(torch_params, compute_dtype=compute_dtype)

        out = mlp_feature_extractor_forward(params, observations)
        out = jax.block_until_ready(out)

        ref = reference_forward(torch_params, observations, net_arch)
        assert out.shape == (batch, features_dim), name
        assert bool(jnp.allclose(out, ref, atol=tol, rtol=tol)), name

    print("KERNEL_OK")
</pallas_src>

<mosaic_0001>
module attributes {stable_mosaic.version = 11 : i64} {
  func.func @_fused_mlp_kernel(%arg0: i32, %arg1: memref<8x16xf32, #tpu.memory_space<vmem>>, %arg2: memref<16x256xf32, #tpu.memory_space<vmem>>, %arg3: memref<1x256xf32, #tpu.memory_space<vmem>>, %arg4: memref<8x256xf32, #tpu.memory_space<vmem>>) attributes {dimension_semantics = [#tpu.dimension_semantics<parallel>], iteration_bounds = array<i64: 1>, scalar_prefetch = 0 : i64, scratch_operands = 0 : i64, tpu.core_type = #tpu.core_type<tc>, window_params = [{transform_indices = @transform_0, window_bounds = array<i64: 8, 16>}, {pipeline_mode = #tpu.pipeline_mode<synchronous>, transform_indices = @transform_1, window_bounds = array<i64: 16, 256>}, {pipeline_mode = #tpu.pipeline_mode<synchronous>, transform_indices = @transform_2, window_bounds = array<i64: 1, 256>}, {transform_indices = @transform_3, window_bounds = array<i64: 8, 256>}]} {
    %c0 = arith.constant 0 : index
    %c0_0 = arith.constant 0 : index
    %0 = vector.load %arg1[%c0, %c0_0] : memref<8x16xf32, #tpu.memory_space<vmem>>, vector<8x16xf32>
    %c0_1 = arith.constant 0 : index
    %c0_2 = arith.constant 0 : index
    %1 = vector.load %arg2[%c0_1, %c0_2] : memref<16x256xf32, #tpu.memory_space<vmem>>, vector<16x256xf32>
    %c0_3 = arith.constant 0 : index
    %c0_4 = arith.constant 0 : index
    %2 = vector.load %arg3[%c0_3, %c0_4] : memref<1x256xf32, #tpu.memory_space<vmem>>, vector<1x256xf32>
    %cst = arith.constant dense<0.000000e+00> : vector<8x256xf32>
    %3 = tpu.matmul %0, %1, %cst {dimension_numbers = #tpu.dot_dimension_numbers<[1], [0], [0], [1], [0, 0, 1, 1], [], []>} : vector<8x16xf32>, vector<16x256xf32>, vector<8x256xf32> -> vector<8x256xf32>
    %4 = vector.broadcast %2 : vector<1x256xf32> to vector<8x256xf32>
    %5 = arith.addf %3, %4 : vector<8x256xf32>
    %c0_5 = arith.constant 0 : index
    %c0_6 = arith.constant 0 : index
    %6 = vector.load %arg4[%c0_5, %c0_6] : memref<8x256xf32, #tpu.memory_space<vmem>>, vector<8x256xf32>
    tpu.vector_store %arg4[%c0_5, %c0_6], %5 {strides = array<i32>} : memref<8x256xf32, #tpu.memory_space<vmem>>, vector<8x256xf32>,
    return
  }
  func.func @transform_0(%arg0: i32) -> (i32, i32) {
    %c0_i32 = arith.constant 0 : i32
    %c0_i32_0 = arith.constant 0 : i32
    return %arg0, %c0_i32 : i32, i32
  }
  func.func @transform_1(%arg0: i32) -> (i32, i32) {
    %c0_i32 = arith.constant 0 : i32
    %c0_i32_0 = arith.constant 0 : i32
    %c0_i32_1 = arith.constant 0 : i32
    return %c0_i32, %c0_i32_0 : i32, i32
  }
  func.func @transform_2(%arg0: i32) -> (i32, i32) {
    %c0_i32 = arith.constant 0 : i32
    %c0_i32_0 = arith.constant 0 : i32
    %c0_i32_1 = arith.constant 0 : i32
    return %c0_i32, %c0_i32_0 : i32, i32
  }
  func.func @transform_3(%arg0: i32) -> (i32, i32) {
    %c0_i32 = arith.constant 0 : i32
    %c0_i32_0 = arith.constant 0 : i32
    return %arg0, %c0_i32 : i32, i32
  }
}

</mosaic_0001>

<bundles_post_ra>
// kernel: tpu_custom_call.1
= control target key start
LH: loop header
LB: loop body
LE: loop exit
PB: predicated region body
PF: predicated region fallthrough
CT: control target
= control target key end

     0   :  { %8 = vsyncpa [#allocation3], 0  ;;  %s306_s0 = inlined_call_operand.hbm [shape: f32[8,16], index: 0, kind: input, shape index: {}]   ;;  %s307_s1 = inlined_call_operand.hbm [shape: f32[16,256], index: 1, kind: input, shape index: {}]   ;;  %s308_s2 = inlined_call_operand.vmem [shape: f32[1,256], index: 2, kind: input, shape index: {}]   ;;  %s309_s3 = inlined_call_operand.hbm [shape: f32[8,256], index: 3, kind: output, shape index: {}]  }
   0x1   :  { %9 = vsyncpa [#allocation6], 0 }
   0x2   :  { %10 = vsyncpa [#allocation4], 0  ;;  %s234_s12 = smov [#allocation2]   ;;  %s235_s14 = smov [#allocation5]  }
   0x3   :  { %s17_s13 = sshll.u32 %s234_s12, 4  ;;  %s26_s15 = sshll.u32 %s235_s14, 4  ;;  %s18_s13 = int_to_ptr.vmem [resolvable:$true] %s17_s13  ;;  %s260_s15 = int_to_ptr.vmem [resolvable:$true] %s26_s15 }
   0x4   :  { %s162_s18 = scalar_lea.hbm %s306_s0, 128 }
   0x5   :  { %p163_p0 = scmp.ne.s32.totalorder %s306_s0, %s162_s18  ;;  %p166_p1 = scmp.lt.u32.totalorder %s162_s18, %s306_s0 }
   0x7   :  { %p168_p2 = pnand %p166_p1, %p163_p0 }
   0x9   :  { %171 = shalt.err (!%p168_p2)
}
   0xa   :  { %s172_s23 = scalar_lea.vmem %s18_s13, 128  ;;  %p177_p4 = scmp.lt.s32.totalorder %s18_s13, %s18_s13 }
   0xb   :  { %p173_p3 = scmp.ne.s32.totalorder %s18_s13, %s172_s23  ;;  %p178_p5 = scmp.lt.s32.totalorder %s172_s23, %s172_s23 }
   0xd   :  { %p179_p6 = por %p178_p5, %p177_p4 }
   0xf   :  { %p180_p7 = pnand %p179_p6, %p173_p3 }
  0x11   :  { %183 = shalt.err (!%p180_p7)
}
  0x12   :  { %20 = dma.hbm_to_vmem [thread:$0]  %s306_s0, 128, %s18_s13, [#allocation3]  }
  0x13   :  { %s184_s28 = scalar_lea.hbm %s307_s1, 512 }
  0x14   :  { %p185_p8 = scmp.ne.s32.totalorder %s307_s1, %s184_s28  ;;  %p188_p9 = scmp.lt.u32.totalorder %s184_s28, %s307_s1 }
  0x16   :  { %p190_p10 = pnand %p188_p9, %p185_p8 }
  0x18   :  { %193 = shalt.err (!%p190_p10)
}
  0x19   :  { %s194_s6 = scalar_lea.vmem %s260_s15, 512  ;;  %p199_p12 = scmp.lt.s32.totalorder %s260_s15, %s260_s15 }
  0x1a   :  { %p195_p11 = scmp.ne.s32.totalorder %s260_s15, %s194_s6  ;;  %p200_p13 = scmp.lt.s32.totalorder %s194_s6, %s194_s6 }
  0x1c   :  { %p201_p0 = por %p200_p13, %p199_p12 }
  0x1e   :  { %p202_p1 = pnand %p201_p0, %p195_p11 }
  0x20   :  { %205 = shalt.err (!%p202_p1)
}
  0x21   :  { %s236_s0 = smov 256   ;;  %s237_s7 = smov 16  }
  0x22   :  { %32 = dma.hbm_to_vmem [thread:$0]  %s307_s1, 512, %s260_s15, [#allocation6], %s236_s0, %s236_s0, %s237_s7  }
  0x23   :  { %228 = dma.done.wait [#allocation3], 128  }
  0x24   :  { %229 = vsyncadd [#allocation3], 4294967168 }
  0x25   :  { %230 = dma.done.wait [#allocation6], 512  }
  0x26   :  { %231 = vsyncadd [#allocation6], 4294966784  ;;  %v238_v0 = vmov 0.0   ;;  %v43_v1 = vld [vmem:[#allocation5 + $0x8] sm:$0xff]  ;;  %v45_v2 = vld [vmem:[#allocation5 + $0x18] sm:$0xff]  ;;  %vm58_vm0 = vcmask 130048   ;;  %v48_v8 = vlaneseq }
  0x27   :  { %126 = vmatprep.mubr.f32.mxu0 %v238_v0  ;;  %v42_v3 = vld [vmem:[#allocation5] sm:$0xff]  ;;  %v152_v4 = vpack.c.bf16 %v45_v2, %v43_v1  ;;  %v44_v5 = vld [vmem:[#allocation5 + $0x10] sm:$0xff]  ;;  %v41_v7 = vld [vmem:[#allocation2] sm:$0xff]  ;;  %s239_s11 = smov [#allocation7]  }
  0x28   :  { %v154_v6 = vpack.c.bf16 %v44_v5, %v42_v3  ;;  %v49_v9 = vshrl.u32 %v48_v8, 7  ;;  %v46_v11 = vld [vmem:[%s308_s2] sm:$0x3]  ;;  %s141_s12 = sshll.u32 %s239_s11, 4  ;;  %s142_s12 = int_to_ptr.vmem [resolvable:$true] %s141_s12 }
  0x29   :  { %153 = vmatprep.subr.bf16.mxu0 %v152_v4  ;;  %s206_s13 = scalar_lea.vmem %s142_s12, 256  ;;  %p211_p3 = scmp.lt.s32.totalorder %s142_s12, %s142_s12 }
  0x2a   :  { %155 = vmatpush1.bf16.msra.mxu0 %v154_v6  ;;  %v50_v10 = vsub.s32 0, %v49_v9  ;;  %v54_v12 = vsub.s32 1, %v49_v9  ;;  %p207_p2 = scmp.ne.s32.totalorder %s142_s12, %s206_s13  ;;  %p212_p4 = scmp.lt.s32.totalorder %s206_s13, %s206_s13 }
  0x2c   :  { %v51_v13 = vrot.slane %v46_v11, %v50_v10  ;;  %v55_v14 = vrot.slane %v46_v11, %v54_v12  ;;  %p213_p5 = por %p212_p4, %p211_p3 }
  0x2d   :  { %151 = vmatmul.mubr.msk.f32.vlgmr.msra.gmra.mrb[0].mxu0 %vm58_vm0, %v41_v7 }
  0x2e   :  { %p214_p6 = pnand %p213_p5, %p207_p2 }
 0x100   :  { %v128_v15 = vpop.f32.mrb[0].mxu0 }
 0x101   :  { %v129_v16 = vadd.f32 %v128_v15, %v51_v13  ;;  %v130_v17 = vpop.f32.mrb[1].mxu0 }
 0x102   :  { %v131_v18 = vadd.f32 %v130_v17, %v55_v14 }
 0x103   :  { %133 = vst [vmem:[#allocation7] sm:$0xff] %v129_v16 }
 0x104   :  { %134 = vst [vmem:[#allocation7 + $0x8] sm:$0xff] %v131_v18 }
 0x105   :  { %217 = shalt.err (!%p214_p6)
}
 0x106   :  { %s218_s15 = scalar_lea.hbm %s309_s3, 256 }
 0x107   :  { %p219_p7 = scmp.ne.s32.totalorder %s309_s3, %s218_s15  ;;  %p222_p8 = scmp.lt.u32.totalorder %s218_s15, %s309_s3 }
 0x109   :  { %p224_p9 = pnand %p222_p8, %p219_p7 }
 0x10b   :  { %227 = shalt.err (!%p224_p9)
}
 0x10c   :  { %144 = dma.vmem_to_hbm [thread:$0]  %s142_s12, 256, %s309_s3, [#allocation4]  }
 0x10d   :  { %232 = dma.done.wait [#allocation4], 256  }
 0x10e   :  { %233 = vsyncadd [#allocation4], 4294967040 }
 0x10f   :  { %148 = vsyncpa [#allocation3], 1 }
 0x110   :  { %149 = vsyncpa [#allocation6], 1 }
 0x111   :  { %150 = vsyncpa [#allocation4], 1 }

</bundles_post_ra>
